<compile_context>
chip_gen: v7x
topology: tpu7x:2x2x1
jax: 0.10.0
libtpu: 0.0.40
codegen_flags: <defaults>
</compile_context>

<pallas_src>
import jax
import jax.numpy as jnp
from jax.experimental import pallas as pl
from jax.experimental.pallas import tpu as pltpu

EPS = 1e-5


def _layer1d_kernel(x_ref, gamma_ref, beta_ref, o_ref):
    # gamma/beta: (1, D) f32; constant block across the grid (stays VMEM-resident).
    g = gamma_ref[...]
    b = beta_ref[...]

    x = x_ref[...].astype(jnp.float32)

    # LayerNorm over the last axis (matches nn.LayerNorm(dim) on (B, D) input).
    # Two-pass moments kept deliberately (E[x^2]-mean^2 one-pass form saves one
    # temporary but risks cancellation for large-magnitude inputs).
    mean = jnp.mean(x, axis=-1, keepdims=True)
    xc = x - mean
    var = jnp.mean(xc * xc, axis=-1, keepdims=True)  # biased variance, like PyTorch LN
    inv = jax.lax.rsqrt(var + EPS)

    # Affine (elementwise_affine=True default) + trans='relu'.
    y = xc * inv * g + b
    y = jnp.maximum(y, 0.0)

    o_ref[...] = y.astype(o_ref.dtype)


def _tpu_info():
    """(vmem_bytes_per_core, tensorcores_per_chip). Conservative fallbacks.

    Falling back to 64 MiB is pessimistic for v5e/v6e (128 MiB) but only matters
    for very large D; the row-tile target (not the budget) binds in common cases.
    """
    vmem = 64 * 1024 * 1024
    cores = 1
    try:
        info = pltpu.get_tpu_info()
        vmem = int(getattr(info, "vmem_capacity_bytes", vmem))
        cores = int(
            getattr(
                info,
                "tensorcores_per_chip",
                getattr(info, "num_cores", getattr(info, "core_count", 1)),
            )
        )
    except Exception:
        pass
    return vmem, max(cores, 1)


def _choose_block_b(B, D, dtype, vmem_total, num_cores):
    """Row-tile size: byte-based target, VMEM budget, dtype alignment, even core split."""
    itemsize = jnp.dtype(dtype).itemsize
    # Min sublane alignment per packed dtype: f32->8, bf16->16, int8/fp8->32.
    align = {4: 8, 2: 16, 1: 32}.get(itemsize, 8)

    # Per-row VMEM bytes: 2x double-buffered input + 2x double-buffered output
    # (input dtype) plus ~4 f32 temporaries (x_f32, centered, normalized, ...).
    per_row = D * (4 * itemsize + 4 * 4)
    budget_rows = max(align, int(vmem_total * 0.6) // per_row)

    # Byte-based tile target (~8 MiB of input per step) so the ~0.35 us per-step
    # overhead is well amortized on all generations (replaces the old 1024-row cap).
    target_rows = max(align, (8 << 20) // (D * itemsize))

    block_b = min(budget_rows, target_rows)
    block_b = max(align, (block_b // align) * align)

    # Never tile beyond the (alignment-padded) batch.
    block_b = min(block_b, pl.cdiv(B, align) * align)

    # Multi-TensorCore chips (v7x): make the number of grid steps a multiple of
    # the core count so the "parallel" row-tile axis splits evenly across cores.
    # Gated on the real core count -> genuinely a no-op on v5e/v6e.
    if num_cores > 1 and B > align:
        grid_b = pl.cdiv(B, block_b)
        if grid_b % num_cores != 0:
            steps = pl.cdiv(grid_b, num_cores) * num_cores
            block_b = max(align, pl.cdiv(pl.cdiv(B, steps), align) * align)

    return block_b


def layer1d_ln_relu(x, gamma, beta, *, block_b=None):
    """ReLU(LayerNorm(x)) computed in a Pallas TPU kernel.

    x:     (B, D) float array
    gamma: (D,)   LayerNorm weight
    beta:  (D,)   LayerNorm bias
    """
    B, D = x.shape
    vmem_total, num_cores = _tpu_info()
    itemsize = jnp.dtype(x.dtype).itemsize

    # Guard: even the minimum-aligned row tile must fit the VMEM budget.
    min_align = {4: 8, 2: 16, 1: 32}.get(itemsize, 8)
    min_tile_bytes = min_align * D * (4 * itemsize + 4 * 4) + (4 << 20)
    assert min_tile_bytes <= int(vmem_total * 0.9), (
        "D too large for a single row-tile; D-axis tiling not implemented."
    )

    if block_b is None:
        block_b = _choose_block_b(B, D, x.dtype, vmem_total, num_cores)

    grid_b = pl.cdiv(B, block_b)

    # No padding / slicing: Pallas handles the ragged last block itself
    # (reads past B see stale rows, but LayerNorm is per-row and OOB writes
    # are masked, so valid output rows are unaffected).

    # Cast affine params to f32 once, outside the per-tile loop.
    gamma2 = gamma.reshape(1, D).astype(jnp.float32)
    beta2 = beta.reshape(1, D).astype(jnp.float32)

    # Scoped VMEM limit from the actual buffers:
    #   2x double-buffered input tile + 2x double-buffered output tile
    #   + f32 temporaries headroom + gamma/beta + margin; clamp to ~90% physical
    #   VMEM so Mosaic internal scratch still has room (matters on v7x's 64 MiB).
    tile_bytes = block_b * D * itemsize
    needed = 4 * tile_bytes + 4 * block_b * D * 4 + 2 * D * 4 + (4 << 20)
    vmem_limit = int(min(int(vmem_total * 0.9), max(needed, 32 << 20)))

    return pl.pallas_call(
        _layer1d_kernel,
        out_shape=jax.ShapeDtypeStruct((B, D), x.dtype),
        grid_spec=pltpu.PrefetchScalarGridSpec(
            num_scalar_prefetch=0,
            grid=(grid_b,),
            in_specs=[
                pl.BlockSpec((block_b, D), lambda i: (i, 0)),
                pl.BlockSpec((1, D), lambda i: (0, 0)),
                pl.BlockSpec((1, D), lambda i: (0, 0)),
            ],
            out_specs=pl.BlockSpec((block_b, D), lambda i: (i, 0)),
        ),
        compiler_params=pltpu.CompilerParams(
            dimension_semantics=("parallel",),
            vmem_limit_bytes=vmem_limit,
        ),
    )(x, gamma2, beta2)


def layer1d_ref(x, gamma, beta):
    """Pure-JAX reference: ReLU(LayerNorm(x))."""
    x32 = x.astype(jnp.float32)
    mean = jnp.mean(x32, axis=-1, keepdims=True)
    var = jnp.mean((x32 - mean) ** 2, axis=-1, keepdims=True)
    y = (x32 - mean) * jax.lax.rsqrt(var + EPS)
    y = y * gamma[None, :].astype(jnp.float32) + beta[None, :].astype(jnp.float32)
    return jnp.maximum(y, 0.0).astype(x.dtype)


if __name__ == "__main__":
    key = jax.random.PRNGKey(0)
    kx, kg, kb = jax.random.split(key, 3)

    # Small shapes consistent with a (batch, features) 1D layer.
    # B=10 deliberately not a multiple of the row alignment to exercise the
    # ragged-last-block path (no pad/slice); D=256 is lane-dense (multiple of 128).
    B, D = 10, 256
    x = jax.random.normal(kx, (B, D), dtype=jnp.float32)
    # Deterministic, non-trivial LayerNorm affine params
    # (PyTorch default would be ones/zeros).
    gamma = 1.0 + 0.1 * jax.random.normal(kg, (D,), dtype=jnp.float32)
    beta = 0.1 * jax.random.normal(kb, (D,), dtype=jnp.float32)

    ref = layer1d_ref(x, gamma, beta)

    # Main run: auto-chosen tile (grid may be 1 or 2 depending on chip).
    out = jax.block_until_ready(layer1d_ln_relu(x, gamma, beta))
    assert out.shape == (B, D)
    assert jnp.allclose(out, ref, atol=1e-5, rtol=1e-5), "mismatch vs reference"

    # Second run forcing a multi-step grid with a ragged last block (block_b=8,
    # grid=2, last block covers rows 8..15 of a 10-row batch) to verify the
    # no-pad / masked-write path on every generation.
    out2 = jax.block_until_ready(layer1d_ln_relu(x, gamma, beta, block_b=8))
    assert jnp.allclose(out2, ref, atol=1e-5, rtol=1e-5), "mismatch (ragged tile)"

    print("KERNEL_OK")
</pallas_src>

<mosaic_0001>
module attributes {stable_mosaic.version = 11 : i64} {
  func.func @_layer1d_kernel(%arg0: i32, %arg1: memref<16x256xf32, #tpu.memory_space<vmem>>, %arg2: memref<1x256xf32, #tpu.memory_space<vmem>>, %arg3: memref<1x256xf32, #tpu.memory_space<vmem>>, %arg4: memref<16x256xf32, #tpu.memory_space<vmem>>) attributes {dimension_semantics = [#tpu.dimension_semantics<parallel>], iteration_bounds = array<i64: 1>, scalar_prefetch = 0 : i64, scratch_operands = 0 : i64, tpu.core_type = #tpu.core_type<tc>, window_params = [{transform_indices = @transform_0, window_bounds = array<i64: 16, 256>}, {pipeline_mode = #tpu.pipeline_mode<synchronous>, transform_indices = @transform_1, window_bounds = array<i64: 1, 256>}, {pipeline_mode = #tpu.pipeline_mode<synchronous>, transform_indices = @transform_2, window_bounds = array<i64: 1, 256>}, {transform_indices = @transform_3, window_bounds = array<i64: 16, 256>}]} {
    %c0 = arith.constant 0 : index
    %c0_0 = arith.constant 0 : index
    %0 = vector.load %arg2[%c0, %c0_0] : memref<1x256xf32, #tpu.memory_space<vmem>>, vector<1x256xf32>
    %c0_1 = arith.constant 0 : index
    %c0_2 = arith.constant 0 : index
    %1 = vector.load %arg3[%c0_1, %c0_2] : memref<1x256xf32, #tpu.memory_space<vmem>>, vector<1x256xf32>
    %c0_3 = arith.constant 0 : index
    %c0_4 = arith.constant 0 : index
    %2 = vector.load %arg1[%c0_3, %c0_4] : memref<16x256xf32, #tpu.memory_space<vmem>>, vector<16x256xf32>
    %cst = arith.constant dense<0.000000e+00> : vector<16xf32>
    %3 = vector.multi_reduction <add>, %2, %cst [1] : vector<16x256xf32> to vector<16xf32>
    %4 = vector.shape_cast %3 : vector<16xf32> to vector<16x1xf32>
    %cst_5 = arith.constant 2.560000e+02 : f32
    %5 = vector.broadcast %cst_5 : f32 to vector<16x1xf32>
    %6 = arith.divf %4, %5 : vector<16x1xf32>
    %7 = vector.broadcast %6 : vector<16x1xf32> to vector<16x256xf32>
    %8 = arith.subf %2, %7 : vector<16x256xf32>
    %9 = arith.mulf %8, %8 : vector<16x256xf32>
    %cst_6 = arith.constant dense<0.000000e+00> : vector<16xf32>
    %10 = vector.multi_reduction <add>, %9, %cst_6 [1] : vector<16x256xf32> to vector<16xf32>
    %11 = vector.shape_cast %10 : vector<16xf32> to vector<16x1xf32>
    %cst_7 = arith.constant 2.560000e+02 : f32
    %12 = vector.broadcast %cst_7 : f32 to vector<16x1xf32>
    %13 = arith.divf %11, %12 : vector<16x1xf32>
    %cst_8 = arith.constant 9.99999974E-6 : f32
    %14 = vector.broadcast %cst_8 : f32 to vector<16x1xf32>
    %15 = arith.addf %13, %14 : vector<16x1xf32>
    %16 = math.rsqrt %15 : vector<16x1xf32>
    %17 = vector.broadcast %16 : vector<16x1xf32> to vector<16x256xf32>
    %18 = arith.mulf %8, %17 : vector<16x256xf32>
    %19 = vector.broadcast %0 : vector<1x256xf32> to vector<16x256xf32>
    %20 = arith.mulf %18, %19 : vector<16x256xf32>
    %21 = vector.broadcast %1 : vector<1x256xf32> to vector<16x256xf32>
    %22 = arith.addf %20, %21 : vector<16x256xf32>
    %cst_9 = arith.constant 0.000000e+00 : f32
    %23 = vector.broadcast %cst_9 : f32 to vector<16x256xf32>
    %24 = arith.maximumf %22, %23 : vector<16x256xf32>
    %c0_10 = arith.constant 0 : index
    %c0_11 = arith.constant 0 : index
    %25 = vector.load %arg4[%c0_10, %c0_11] : memref<16x256xf32, #tpu.memory_space<vmem>>, vector<16x256xf32>
    tpu.vector_store %arg4[%c0_10, %c0_11], %24 {strides = array<i32>} : memref<16x256xf32, #tpu.memory_space<vmem>>, vector<16x256xf32>,
    return
  }
  func.func @transform_0(%arg0: i32) -> (i32, i32) {
    %c0_i32 = arith.constant 0 : i32
    %c0_i32_0 = arith.constant 0 : i32
    return %arg0, %c0_i32 : i32, i32
  }
  func.func @transform_1(%arg0: i32) -> (i32, i32) {
    %c0_i32 = arith.constant 0 : i32
    %c0_i32_0 = arith.constant 0 : i32
    %c0_i32_1 = arith.constant 0 : i32
    return %c0_i32, %c0_i32_0 : i32, i32
  }
  func.func @transform_2(%arg0: i32) -> (i32, i32) {
    %c0_i32 = arith.constant 0 : i32
    %c0_i32_0 = arith.constant 0 : i32
    %c0_i32_1 = arith.constant 0 : i32
    return %c0_i32, %c0_i32_0 : i32, i32
  }
  func.func @transform_3(%arg0: i32) -> (i32, i32) {
    %c0_i32 = arith.constant 0 : i32
    %c0_i32_0 = arith.constant 0 : i32
    return %arg0, %c0_i32 : i32, i32
  }
}

</mosaic_0001>

<bundles_post_ra>
// kernel: tpu_custom_call.1
= control target key start
LH: loop header
LB: loop body
LE: loop exit
PB: predicated region body
PF: predicated region fallthrough
CT: control target
= control target key end

     0   :  { %8 = vsyncpa [#allocation3], 0  ;;  %s239_s0 = inlined_call_operand.hbm [shape: f32[10,256], index: 0, kind: input, shape index: {}]   ;;  %s240_s1 = inlined_call_operand.vmem [shape: f32[1,256], index: 1, kind: input, shape index: {}]   ;;  %s241_s2 = inlined_call_operand.vmem [shape: f32[1,256], index: 2, kind: input, shape index: {}]   ;;  %s242_s3 = inlined_call_operand.hbm [shape: f32[10,256], index: 3, kind: output, shape index: {}]  }
   0x1   :  { %9 = vsyncpa [#allocation4], 0  ;;  %s179_s12 = smov [#allocation2]   ;;  %s131_s16 = scalar_lea.hbm %s239_s0, 512 }
   0x2   :  { %s15_s13 = sshll.u32 %s179_s12, 4  ;;  %p132_p0 = scmp.ne.s32.totalorder %s239_s0, %s131_s16  ;;  %s16_s13 = int_to_ptr.vmem [resolvable:$true] %s15_s13 }
   0x3   :  { %p135_p1 = scmp.lt.u32.totalorder %s131_s16, %s239_s0 }
   0x5   :  { %p137_p2 = pnand %p135_p1, %p132_p0 }
   0x7   :  { %140 = shalt.err (!%p137_p2)
}
   0x8   :  { %s141_s21 = scalar_lea.vmem %s16_s13, 512  ;;  %p146_p4 = scmp.lt.s32.totalorder %s16_s13, %s16_s13 }
   0x9   :  { %p142_p3 = scmp.ne.s32.totalorder %s16_s13, %s141_s21  ;;  %p147_p5 = scmp.lt.s32.totalorder %s141_s21, %s141_s21 }
   0xb   :  { %p148_p6 = por %p147_p5, %p146_p4 }
   0xd   :  { %p149_p7 = pnand %p148_p6, %p142_p3 }
   0xf   :  { %152 = shalt.err (!%p149_p7)
}
  0x10   :  { %s180_s22 = smov 256   ;;  %s181_s23 = smov 16  }
  0x11   :  { %21 = dma.hbm_to_vmem [thread:$0]  %s239_s0, 512, %s16_s13, [#allocation3], %s180_s22, %s180_s22, %s181_s23  }
  0x12   :  { %175 = dma.done.wait [#allocation3], 512  }
  0x13   :  { %176 = vsyncadd [#allocation3], 4294966784  ;;  %v31_v0 = vld [vmem:[#allocation2] sm:$0xff]  ;;  %v32_v1 = vld [vmem:[#allocation2 + $0x8] sm:$0xff]  ;;  %v69_v22 = vlaneseq }
  0x14   :  { %v33_v2 = vld [vmem:[#allocation2 + $0x10] sm:$0xff]  ;;  %v35_v3 = vadd.f32 %v32_v1, %v31_v0  ;;  %v34_v4 = vld [vmem:[#allocation2 + $0x18] sm:$0xff]  ;;  %v29_v30 = vld [vmem:[%s240_s1] sm:$0x3]  ;;  %s182_s1 = smov [#allocation5]  }
  0x15   :  { %v38_v5 = vadd.f32 %v34_v4, %v33_v2  ;;  %v70_v26 = vshrl.u32 %v69_v22, 7  ;;  %v30_v31 = vld [vmem:[%s241_s2] sm:$0x3]  ;;  %s111_s2 = sshll.u32 %s182_s1, 4  ;;  %s112_s2 = int_to_ptr.vmem [resolvable:$true] %s111_s2 }
  0x16   :  { %36 = vadd.xlane.f32.xlu0 %v35_v3  ;;  %s153_s29 = scalar_lea.vmem %s112_s2, 512  ;;  %p158_p9 = scmp.lt.s32.totalorder %s112_s2, %s112_s2 }
  0x17   :  { %v71_v28 = vsub.s32 0, %v70_v26  ;;  %v75_v29 = vsub.s32 1, %v70_v26  ;;  %p154_p8 = scmp.ne.s32.totalorder %s112_s2, %s153_s29  ;;  %p159_p10 = scmp.lt.s32.totalorder %s153_s29, %s153_s29 }
  0x19   :  { %v72_v32 = vrot.slane %v29_v30, %v71_v28  ;;  %v76_v33 = vrot.slane %v29_v30, %v75_v29  ;;  %v87_v37 = vrot.slane %v30_v31, %v71_v28  ;;  %v91_v38 = vrot.slane %v30_v31, %v75_v29  ;;  %p160_p11 = por %p159_p10, %p158_p9 }
  0x1a   :  { %39 = vadd.xlane.f32.xlu0 %v38_v5 }
  0x1b   :  { %p161_p12 = pnand %p160_p11, %p154_p8 }
  0xa3   :  { %v37_v6 = vpop.xlane.xlu0 %36 }
  0xa4   :  { %v42_v7 = vmul.f32 0.00390625, %v37_v6 }
  0xa6   :  { %v44_v8 = vsub.f32 %v31_v0, %v42_v7  ;;  %v45_v9 = vsub.f32 %v32_v1, %v42_v7 }
  0xa7   :  { %v40_v10 = vpop.xlane.xlu0 %39 }
  0xa8   :  { %v43_v11 = vmul.f32 0.00390625, %v40_v10  ;;  %v48_v12 = vmul.f32 %v44_v8, %v44_v8  ;;  %v49_v13 = vmul.f32 %v45_v9, %v45_v9 }
  0xaa   :  { %v46_v14 = vsub.f32 %v33_v2, %v43_v11  ;;  %v47_v15 = vsub.f32 %v34_v4, %v43_v11  ;;  %v52_v16 = vadd.f32 %v49_v13, %v48_v12 }
  0xac   :  { %53 = vadd.xlane.f32.xlu1 %v52_v16  ;;  %v50_v17 = vmul.f32 %v46_v14, %v46_v14  ;;  %v51_v18 = vmul.f32 %v47_v15, %v47_v15 }
  0xae   :  { %v55_v19 = vadd.f32 %v51_v18, %v50_v17 }
  0xb0   :  { %56 = vadd.xlane.f32.xlu1 %v55_v19 }
 0x139   :  { %v54_v20 = vpop.xlane.xlu1 %53 }
 0x13a   :  { %v58_v21 = vmul.f32 0.00390625, %v54_v20 }
 0x13c   :  { %v60_v23 = vadd.f32 1e-05, %v58_v21 }
 0x13d   :  { %v57_v24 = vpop.xlane.xlu1 %56 }
 0x13e   :  { %127 = vrsqrt.f32 %v60_v23  ;;  %v59_v25 = vmul.f32 0.00390625, %v57_v24 }
 0x140   :  { %v61_v27 = vadd.f32 1e-05, %v59_v25 }
 0x142   :  { %129 = vrsqrt.f32 %v61_v27 }
 0x148   :  { %v128_v34 = vpop.eup %127 }
 0x149   :  { %v64_v35 = vmul.f32 %v128_v34, %v44_v8  ;;  %v65_v36 = vmul.f32 %v128_v34, %v45_v9 }
 0x14b   :  { %v79_v39 = vmul.f32 %v72_v32, %v64_v35  ;;  %v80_v40 = vmul.f32 %v76_v33, %v65_v36 }
 0x14c   :  { %v130_v41 = vpop.eup %129 }
 0x14d   :  { %v66_v42 = vmul.f32 %v130_v41, %v46_v14  ;;  %v67_v43 = vmul.f32 %v130_v41, %v47_v15  ;;  %v94_v44 = vadd.f32 %v87_v37, %v79_v39  ;;  %v95_v45 = vadd.f32 %v91_v38, %v80_v40 }
 0x14f   :  { %v81_v46 = vmul.f32 %v72_v32, %v66_v42  ;;  %v82_v47 = vmul.f32 %v76_v33, %v67_v43  ;;  %v98_v48 = vmax.f32 %v94_v44, 0.0  ;;  %v99_v49 = vmax.f32 %v95_v45, 0.0 }
 0x151   :  { %v96_v50 = vadd.f32 %v87_v37, %v81_v46  ;;  %v97_v51 = vadd.f32 %v91_v38, %v82_v47  ;;  %102 = vst [vmem:[#allocation5] sm:$0xff] %v98_v48  ;;  %103 = vst [vmem:[#allocation5 + $0x8] sm:$0xff] %v99_v49 }
 0x153   :  { %v100_v52 = vmax.f32 %v96_v50, 0.0  ;;  %v101_v53 = vmax.f32 %v97_v51, 0.0 }
 0x155   :  { %104 = vst [vmem:[#allocation5 + $0x10] sm:$0xff] %v100_v52  ;;  %105 = vst [vmem:[#allocation5 + $0x18] sm:$0xff] %v101_v53 }
 0x156   :  { %164 = shalt.err (!%p161_p12)
}
 0x157   :  { %s165_s5 = scalar_lea.hbm %s242_s3, 512 }
 0x158   :  { %p166_p13 = scmp.ne.s32.totalorder %s242_s3, %s165_s5  ;;  %p169_p0 = scmp.lt.u32.totalorder %s165_s5, %s242_s3 }
 0x15a   :  { %p171_p1 = pnand %p169_p0, %p166_p13 }
 0x15c   :  { %174 = shalt.err (!%p171_p1)
}
 0x15d   :  { %117 = dma.vmem_to_hbm [thread:$0]  %s112_s2, 512, %s242_s3, [#allocation4], %s180_s22, %s180_s22, %s181_s23  }
 0x15e   :  { %177 = dma.done.wait [#allocation4], 512  }
 0x15f   :  { %178 = vsyncadd [#allocation4], 4294966784 }
 0x160   :  { %121 = vsyncpa [#allocation3], 1 }
 0x161   :  { %122 = vsyncpa [#allocation4], 1 }

</bundles_post_ra>
